<compile_context>
chip_gen: v5e
topology: v5e:2x2
jax: 0.10.0
libtpu: 0.0.40
codegen_flags: <defaults>
</compile_context>

<pallas_src>
import functools
import math

import jax
import jax.numpy as jnp
from jax.experimental import pallas as pl
from jax.experimental.pallas import tpu as pltpu


def _gaussian_noise_kernel(seed_ref, x_ref, o_ref, *, mean, std):
    tile_r, tile_c = x_ref.shape
    i = pl.program_id(0)

    # Global element index: each grid step gets a distinct counter range, so
    # tiles never repeat the same noise pattern.
    row = jax.lax.broadcasted_iota(jnp.int32, (tile_r, tile_c), 0)
    col = jax.lax.broadcasted_iota(jnp.int32, (tile_r, tile_c), 1)
    idx = ((i * tile_r + row) * tile_c + col).astype(jnp.uint32)

    # splitmix32 / lowbias32-style avalanche hash; seed folded in via a Weyl step.
    seed = seed_ref[0].astype(jnp.uint32)
    h = idx + seed * jnp.uint32(0x9E3779B9)
    h = (h ^ (h >> 16)) * jnp.uint32(0x7FEB352D)
    h = (h ^ (h >> 15)) * jnp.uint32(0x846CA68B)
    h = h ^ (h >> 16)

    # Top 23 bits -> uniform strictly inside (0, 1).
    bits = (h >> 9).astype(jnp.int32)
    u = (bits.astype(jnp.float32) + jnp.float32(0.5)) * jnp.float32(1.0 / (1 << 23))

    # Standard normal via the inverse CDF: z = sqrt(2) * erfinv(2u - 1).
    z = jnp.float32(math.sqrt(2.0)) * jax.lax.erf_inv(
        jnp.float32(2.0) * u - jnp.float32(1.0))

    # Match torch: noise = (mean + std * randn).to(x.dtype); y = x + noise.
    noise = (jnp.float32(mean) + jnp.float32(std) * z).astype(o_ref.dtype)
    o_ref[...] = x_ref[...] + noise


def gaussian_noise_layer(x, *, mean=0.0, std=0.0, training=True, seed=0):
    """JAX/Pallas equivalent of GaussianNoiseLayer.forward (NCHW input)."""
    if not training:
        return x
    mean = float(mean)
    std = float(std)
    if std == 0.0:
        # Module defaults (mean=0, std=0) -> identity; std==0 -> constant shift.
        return x if mean == 0.0 else x + jnp.asarray(mean, dtype=x.dtype)

    orig_shape = x.shape
    total = x.size

    # Lane-dense 2-D slab: last dim a multiple of 128 (prefer 1024).  Pad the
    # flattened array once only if no candidate divides the element count.
    lane = next((l for l in (1024, 512, 256, 128) if total % l == 0), None)
    flat = x.reshape(-1)
    pad = 0
    if lane is None:
        lane = 128
        pad = (-total) % lane
        flat = jnp.pad(flat, (0, pad))
    rows = flat.size // lane
    x2d = flat.reshape(rows, lane)

    # ~2 MiB blocks: amortizes per-step overhead, and with double buffering
    # (in + out) stays well inside v5e's 16 MiB scoped-VMEM default.
    bytes_per_row = lane * x2d.dtype.itemsize
    tile_rows = max(8, ((2 * 1024 * 1024) // bytes_per_row) // 8 * 8)
    if rows <= tile_rows:
        tile_rows = rows  # full extent is always a legal block dim
    num_tiles = pl.cdiv(rows, tile_rows)

    seed_arr = jnp.asarray([seed], dtype=jnp.int32)
    kernel = functools.partial(_gaussian_noise_kernel, mean=mean, std=std)

    y2d = pl.pallas_call(
        kernel,
        grid=(num_tiles,),
        out_shape=jax.ShapeDtypeStruct(x2d.shape, x2d.dtype),
        in_specs=[
            pl.BlockSpec(memory_space=pltpu.MemorySpace.SMEM),  # seed scalar
            pl.BlockSpec((tile_rows, lane), lambda i: (i, 0)),  # x tile
        ],
        out_specs=pl.BlockSpec((tile_rows, lane), lambda i: (i, 0)),
        compiler_params=pltpu.CompilerParams(
            dimension_semantics=("parallel",),  # shard grid over v7x's 2 TCs
        ),
    )(seed_arr, x2d)

    y_flat = y2d.reshape(-1)
    if pad:
        y_flat = y_flat[:total]
    return y_flat.reshape(orig_shape)


if __name__ == "__main__":
    key = jax.random.PRNGKey(0)
    x = jax.random.normal(key, (2, 4, 16, 16), dtype=jnp.float32)

    mean, std = 0.1, 0.05

    # Training path: x + (mean + std * N(0, 1)).
    y = gaussian_noise_layer(x, mean=mean, std=std, training=True, seed=1234)
    y = jax.block_until_ready(y)
    assert y.shape == x.shape and y.dtype == x.dtype

    delta = y - x
    assert abs(float(jnp.mean(delta)) - mean) < 0.02, float(jnp.mean(delta))
    assert abs(float(jnp.std(delta)) - std) < 0.02, float(jnp.std(delta))

    # Different seeds -> different noise.
    y2 = gaussian_noise_layer(x, mean=mean, std=std, training=True, seed=4321)
    y2 = jax.block_until_ready(y2)
    assert bool(jnp.any(y2 != y))

    # Eval path: identity.
    y_eval = gaussian_noise_layer(x, mean=mean, std=std, training=False)
    assert bool(jnp.all(jax.block_until_ready(y_eval) == x))

    # std == 0 short-circuit: exact constant shift.
    y_shift = gaussian_noise_layer(x, mean=0.5, std=0.0, training=True)
    assert bool(jnp.allclose(jax.block_until_ready(y_shift), x + 0.5))

    print("KERNEL_OK")
</pallas_src>

<mosaic_0001>
module attributes {stable_mosaic.version = 11 : i64} {
  func.func @_gaussian_noise_kernel(%arg0: i32, %arg1: memref<1xi32, #tpu.memory_space<smem>>, %arg2: memref<2x1024xf32, #tpu.memory_space<vmem>>, %arg3: memref<2x1024xf32, #tpu.memory_space<vmem>>) attributes {dimension_semantics = [#tpu.dimension_semantics<parallel>], iteration_bounds = array<i64: 1>, scalar_prefetch = 0 : i64, scratch_operands = 0 : i64, tpu.core_type = #tpu.core_type<tc>, window_params = [{transform_indices = @transform_0, window_bounds = array<i64: 1>}, {transform_indices = @transform_1, window_bounds = array<i64: 2, 1024>}, {transform_indices = @transform_2, window_bounds = array<i64: 2, 1024>}]} {
    %0 = tpu.iota {dimensions = array<i32: 0>} : vector<2x1024xi32>
    %1 = tpu.iota {dimensions = array<i32: 1>} : vector<2x1024xi32>
    %c2_i32 = arith.constant 2 : i32
    %2 = arith.muli %arg0, %c2_i32 : i32
    %3 = vector.broadcast %2 : i32 to vector<2x1024xi32>
    %4 = arith.addi %3, %0 : vector<2x1024xi32>
    %c1024_i32 = arith.constant 1024 : i32
    %5 = vector.broadcast %c1024_i32 : i32 to vector<2x1024xi32>
    %6 = arith.muli %4, %5 : vector<2x1024xi32>
    %7 = arith.addi %6, %1 : vector<2x1024xi32>
    %c0 = arith.constant 0 : index
    %8 = memref.load %arg1[%c0] : memref<1xi32, #tpu.memory_space<smem>>
    %c-1640531527_i32 = arith.constant -1640531527 : i32
    %9 = arith.muli %8, %c-1640531527_i32 : i32
    %10 = vector.broadcast %9 : i32 to vector<2x1024xi32>
    %11 = arith.addi %7, %10 : vector<2x1024xi32>
    %c16_i32 = arith.constant 16 : i32
    %12 = vector.broadcast %c16_i32 : i32 to vector<2x1024xi32>
    %13 = arith.shrui %11, %12 : vector<2x1024xi32>
    %14 = arith.xori %11, %13 : vector<2x1024xi32>
    %c2146121005_i32 = arith.constant 2146121005 : i32
    %15 = vector.broadcast %c2146121005_i32 : i32 to vector<2x1024xi32>
    %16 = arith.muli %14, %15 : vector<2x1024xi32>
    %c15_i32 = arith.constant 15 : i32
    %17 = vector.broadcast %c15_i32 : i32 to vector<2x1024xi32>
    %18 = arith.shrui %16, %17 : vector<2x1024xi32>
    %19 = arith.xori %16, %18 : vector<2x1024xi32>
    %c-2073254261_i32 = arith.constant -2073254261 : i32
    %20 = vector.broadcast %c-2073254261_i32 : i32 to vector<2x1024xi32>
    %21 = arith.muli %19, %20 : vector<2x1024xi32>
    %c16_i32_0 = arith.constant 16 : i32
    %22 = vector.broadcast %c16_i32_0 : i32 to vector<2x1024xi32>
    %23 = arith.shrui %21, %22 : vector<2x1024xi32>
    %24 = arith.xori %21, %23 : vector<2x1024xi32>
    %c9_i32 = arith.constant 9 : i32
    %25 = vector.broadcast %c9_i32 : i32 to vector<2x1024xi32>
    %26 = arith.shrui %24, %25 : vector<2x1024xi32>
    %27 = arith.sitofp %26 : vector<2x1024xi32> to vector<2x1024xf32>
    %cst = arith.constant 5.000000e-01 : f32
    %28 = vector.broadcast %cst : f32 to vector<2x1024xf32>
    %29 = arith.addf %27, %28 : vector<2x1024xf32>
    %cst_1 = arith.constant 1.1920929E-7 : f32
    %30 = vector.broadcast %cst_1 : f32 to vector<2x1024xf32>
    %31 = arith.mulf %29, %30 : vector<2x1024xf32>
    %cst_2 = arith.constant 2.000000e+00 : f32
    %32 = vector.broadcast %cst_2 : f32 to vector<2x1024xf32>
    %33 = arith.mulf %32, %31 : vector<2x1024xf32>
    %cst_3 = arith.constant 1.000000e+00 : f32
    %34 = vector.broadcast %cst_3 : f32 to vector<2x1024xf32>
    %35 = arith.subf %33, %34 : vector<2x1024xf32>
    %cst_4 = arith.constant 0.000000e+00 : f32
    %36 = vector.broadcast %cst_4 : f32 to vector<2x1024xf32>
    %37 = arith.subf %36, %35 : vector<2x1024xf32>
    %38 = arith.mulf %35, %37 : vector<2x1024xf32>
    %39 = math.log1p %38 : vector<2x1024xf32>
    %cst_5 = arith.constant 0.000000e+00 : f32
    %40 = vector.broadcast %cst_5 : f32 to vector<2x1024xf32>
    %41 = arith.subf %40, %39 : vector<2x1024xf32>
    %cst_6 = arith.constant 5.000000e+00 : f32
    %42 = vector.broadcast %cst_6 : f32 to vector<2x1024xf32>
    %43 = arith.cmpf olt, %41, %42 : vector<2x1024xf32>
    %cst_7 = arith.constant 2.500000e+00 : f32
    %44 = vector.broadcast %cst_7 : f32 to vector<2x1024xf32>
    %45 = arith.subf %41, %44 : vector<2x1024xf32>
    %46 = math.sqrt %41 : vector<2x1024xf32>
    %cst_8 = arith.constant 3.000000e+00 : f32
    %47 = vector.broadcast %cst_8 : f32 to vector<2x1024xf32>
    %48 = arith.subf %46, %47 : vector<2x1024xf32>
    %49 = arith.select %43, %45, %48 : vector<2x1024xi1>, vector<2x1024xf32>
    %cst_9 = arith.constant 2.81022636E-8 : f32
    %cst_10 = arith.constant -2.00214257E-4 : f32
    %50 = vector.broadcast %cst_9 : f32 to vector<2x1024xf32>
    %51 = vector.broadcast %cst_10 : f32 to vector<2x1024xf32>
    %52 = arith.select %43, %50, %51 : vector<2x1024xi1>, vector<2x1024xf32>
    %cst_11 = arith.constant 3.43273939E-7 : f32
    %cst_12 = arith.constant 1.00950558E-4 : f32
    %53 = vector.broadcast %cst_11 : f32 to vector<2x1024xf32>
    %54 = vector.broadcast %cst_12 : f32 to vector<2x1024xf32>
    %55 = arith.select %43, %53, %54 : vector<2x1024xi1>, vector<2x1024xf32>
    %56 = arith.mulf %52, %49 : vector<2x1024xf32>
    %57 = arith.addf %55, %56 : vector<2x1024xf32>
    %cst_13 = arith.constant -3.5233877E-6 : f32
    %cst_14 = arith.constant 0.00134934322 : f32
    %58 = vector.broadcast %cst_13 : f32 to vector<2x1024xf32>
    %59 = vector.broadcast %cst_14 : f32 to vector<2x1024xf32>
    %60 = arith.select %43, %58, %59 : vector<2x1024xi1>, vector<2x1024xf32>
    %61 = arith.mulf %57, %49 : vector<2x1024xf32>
    %62 = arith.addf %60, %61 : vector<2x1024xf32>
    %cst_15 = arith.constant -4.39150654E-6 : f32
    %cst_16 = arith.constant -0.00367342844 : f32
    %63 = vector.broadcast %cst_15 : f32 to vector<2x1024xf32>
    %64 = vector.broadcast %cst_16 : f32 to vector<2x1024xf32>
    %65 = arith.select %43, %63, %64 : vector<2x1024xi1>, vector<2x1024xf32>
    %66 = arith.mulf %62, %49 : vector<2x1024xf32>
    %67 = arith.addf %65, %66 : vector<2x1024xf32>
    %cst_17 = arith.constant 2.1858087E-4 : f32
    %cst_18 = arith.constant 0.00573950773 : f32
    %68 = vector.broadcast %cst_17 : f32 to vector<2x1024xf32>
    %69 = vector.broadcast %cst_18 : f32 to vector<2x1024xf32>
    %70 = arith.select %43, %68, %69 : vector<2x1024xi1>, vector<2x1024xf32>
    %71 = arith.mulf %67, %49 : vector<2x1024xf32>
    %72 = arith.addf %70, %71 : vector<2x1024xf32>
    %cst_19 = arith.constant -0.00125372503 : f32
    %cst_20 = arith.constant -0.0076224613 : f32
    %73 = vector.broadcast %cst_19 : f32 to vector<2x1024xf32>
    %74 = vector.broadcast %cst_20 : f32 to vector<2x1024xf32>
    %75 = arith.select %43, %73, %74 : vector<2x1024xi1>, vector<2x1024xf32>
    %76 = arith.mulf %72, %49 : vector<2x1024xf32>
    %77 = arith.addf %75, %76 : vector<2x1024xf32>
    %cst_21 = arith.constant -0.00417768164 : f32
    %cst_22 = arith.constant 0.00943887047 : f32
    %78 = vector.broadcast %cst_21 : f32 to vector<2x1024xf32>
    %79 = vector.broadcast %cst_22 : f32 to vector<2x1024xf32>
    %80 = arith.select %43, %78, %79 : vector<2x1024xi1>, vector<2x1024xf32>
    %81 = arith.mulf %77, %49 : vector<2x1024xf32>
    %82 = arith.addf %80, %81 : vector<2x1024xf32>
    %cst_23 = arith.constant 0.246640727 : f32
    %cst_24 = arith.constant 1.00167406 : f32
    %83 = vector.broadcast %cst_23 : f32 to vector<2x1024xf32>
    %84 = vector.broadcast %cst_24 : f32 to vector<2x1024xf32>
    %85 = arith.select %43, %83, %84 : vector<2x1024xi1>, vector<2x1024xf32>
    %86 = arith.mulf %82, %49 : vector<2x1024xf32>
    %87 = arith.addf %85, %86 : vector<2x1024xf32>
    %cst_25 = arith.constant 1.50140941 : f32
    %cst_26 = arith.constant 2.83297682 : f32
    %88 = vector.broadcast %cst_25 : f32 to vector<2x1024xf32>
    %89 = vector.broadcast %cst_26 : f32 to vector<2x1024xf32>
    %90 = arith.select %43, %88, %89 : vector<2x1024xi1>, vector<2x1024xf32>
    %91 = arith.mulf %87, %49 : vector<2x1024xf32>
    %92 = arith.addf %90, %91 : vector<2x1024xf32>
    %93 = math.absf %35 : vector<2x1024xf32>
    %cst_27 = arith.constant 1.000000e+00 : f32
    %94 = vector.broadcast %cst_27 : f32 to vector<2x1024xf32>
    %95 = arith.cmpf oeq, %93, %94 : vector<2x1024xf32>
    %cst_28 = arith.constant 0x7F800000 : f32
    %96 = vector.broadcast %cst_28 : f32 to vector<2x1024xf32>
    %97 = arith.mulf %96, %35 : vector<2x1024xf32>
    %98 = arith.mulf %92, %35 : vector<2x1024xf32>
    %99 = arith.select %95, %97, %98 : vector<2x1024xi1>, vector<2x1024xf32>
    %cst_29 = arith.constant 1.41421354 : f32
    %100 = vector.broadcast %cst_29 : f32 to vector<2x1024xf32>
    %101 = arith.mulf %100, %99 : vector<2x1024xf32>
    %cst_30 = arith.constant 5.000000e-02 : f32
    %102 = vector.broadcast %cst_30 : f32 to vector<2x1024xf32>
    %103 = arith.mulf %102, %101 : vector<2x1024xf32>
    %cst_31 = arith.constant 1.000000e-01 : f32
    %104 = vector.broadcast %cst_31 : f32 to vector<2x1024xf32>
    %105 = arith.addf %104, %103 : vector<2x1024xf32>
    %c0_32 = arith.constant 0 : index
    %c0_33 = arith.constant 0 : index
    %106 = vector.load %arg2[%c0_32, %c0_33] : memref<2x1024xf32, #tpu.memory_space<vmem>>, vector<2x1024xf32>
    %107 = arith.addf %106, %105 : vector<2x1024xf32>
    %c0_34 = arith.constant 0 : index
    %c0_35 = arith.constant 0 : index
    %108 = vector.load %arg3[%c0_34, %c0_35] : memref<2x1024xf32, #tpu.memory_space<vmem>>, vector<2x1024xf32>
    tpu.vector_store %arg3[%c0_34, %c0_35], %107 {strides = array<i32>} : memref<2x1024xf32, #tpu.memory_space<vmem>>, vector<2x1024xf32>,
    return
  }
  func.func @transform_0(%arg0: i32) -> i32 {
    %c0_i32 = arith.constant 0 : i32
    %c0_i32_0 = arith.constant 0 : i32
    return %c0_i32 : i32
  }
  func.func @transform_1(%arg0: i32) -> (i32, i32) {
    %c0_i32 = arith.constant 0 : i32
    %c0_i32_0 = arith.constant 0 : i32
    return %arg0, %c0_i32 : i32, i32
  }
  func.func @transform_2(%arg0: i32) -> (i32, i32) {
    %c0_i32 = arith.constant 0 : i32
    %c0_i32_0 = arith.constant 0 : i32
    return %arg0, %c0_i32 : i32, i32
  }
}

</mosaic_0001>

<bundles_post_ra>
// kernel: tpu_custom_call.1
= control target key start
LH: loop header
LB: loop body
LE: loop exit
PB: predicated region body
PF: predicated region fallthrough
CT: control target
= control target key end

     0   :  { %8 = vsyncpa [#allocation4], 0  ;;  %s1453_s0 = inlined_call_operand.<no memory space> [shape: s32[1], index: 0, kind: input, shape index: {}]   ;;  %s1454_s1 = inlined_call_operand.hbm [shape: f32[2,1024], index: 1, kind: input, shape index: {}]   ;;  %s1455_s2 = inlined_call_operand.hbm [shape: f32[2,1024], index: 2, kind: output, shape index: {}]  }
   0x1   :  { %9 = vsyncpa [#allocation5], 0  ;;  %s17_s11 = sshll.u32 %s1454_s1, 4  ;;  %s828_s12 = smov [#allocation3]   ;;  %s18_s11 = int_to_ptr.hbm [resolvable:$true] %s17_s11 }
   0x2   :  { %s19_s13 = sshll.u32 %s828_s12, 4  ;;  %s20_s13 = int_to_ptr.vmem [resolvable:$true] %s19_s13 }
   0x3   :  { %22 = dma.hbm_to_vmem [thread:$0]  %s18_s11, 256, %s20_s13, [#allocation4]  }
   0x4   :  { %824 = dma.done.wait [#allocation4], 256  }
   0x5   :  { %825 = vsyncadd [#allocation4], 4294967040  ;;  %v27_v0 = vlaneseq  ;;  %s51_s16 = smul.u32 2654435769, %s1453_s0  ;;  %s838_s0 = smov [#allocation6]  }
   0x6   :  { %s697_s1 = sshll.u32 %s838_s0, 4  ;;  %s699_s19 = sshll.u32 %s1455_s2, 4  ;;  %s698_s1 = int_to_ptr.vmem [resolvable:$true] %s697_s1  ;;  %s700_s19 = int_to_ptr.hbm [resolvable:$true] %s699_s19 }
   0x7   :  { %v28_v1 = vshrl.u32 %v27_v0, 7  ;;  %v30_v2 = vand.u32 127, %v27_v0  ;;  %v52_v11 = vstv %s51_s16 }
   0x9   :  { %v31_v3 = vadd.s32 128, %v30_v2  ;;  %v32_v4 = vadd.s32 256, %v30_v2  ;;  %v33_v5 = vadd.s32 384, %v30_v2  ;;  %v34_v6 = vadd.s32 512, %v30_v2 }
   0xa   :  { %v35_v7 = vadd.s32 640, %v30_v2  ;;  %v36_v8 = vadd.s32 768, %v30_v2  ;;  %v37_v9 = vadd.s32 896, %v30_v2  ;;  %v41_v10 = vmul.u32 1024, %v28_v1 }
   0xc   :  { %v42_v12 = vadd.s32 %v41_v10, %v30_v2  ;;  %v43_v13 = vadd.s32 %v41_v10, %v31_v3  ;;  %v44_v14 = vadd.s32 %v41_v10, %v32_v4  ;;  %v45_v15 = vadd.s32 %v41_v10, %v33_v5 }
   0xd   :  { %v46_v16 = vadd.s32 %v41_v10, %v34_v6  ;;  %v47_v17 = vadd.s32 %v41_v10, %v35_v7  ;;  %v48_v18 = vadd.s32 %v41_v10, %v36_v8  ;;  %v49_v19 = vadd.s32 %v41_v10, %v37_v9 }
   0xe   :  { %v53_v20 = vadd.s32 %v52_v11, %v42_v12  ;;  %v54_v21 = vadd.s32 %v52_v11, %v43_v13  ;;  %v55_v22 = vadd.s32 %v52_v11, %v44_v14  ;;  %v56_v23 = vadd.s32 %v52_v11, %v45_v15 }
   0xf   :  { %v57_v24 = vadd.s32 %v52_v11, %v46_v16  ;;  %v58_v25 = vadd.s32 %v52_v11, %v47_v17  ;;  %v59_v26 = vadd.s32 %v52_v11, %v48_v18  ;;  %v60_v27 = vadd.s32 %v52_v11, %v49_v19 }
  0x10   :  { %v61_v28 = vshrl.u32 %v53_v20, 16  ;;  %v62_v29 = vshrl.u32 %v54_v21, 16  ;;  %v63_v30 = vshrl.u32 %v55_v22, 16  ;;  %v64_v31 = vshrl.u32 %v56_v23, 16 }
  0x11   :  { %v65_v32 = vshrl.u32 %v57_v24, 16  ;;  %v66_v33 = vshrl.u32 %v58_v25, 16  ;;  %v67_v34 = vshrl.u32 %v59_v26, 16  ;;  %v68_v35 = vshrl.u32 %v60_v27, 16 }
  0x12   :  { %v69_v36 = vxor.u32 %v61_v28, %v53_v20  ;;  %v70_v37 = vxor.u32 %v62_v29, %v54_v21  ;;  %v71_v38 = vxor.u32 %v63_v30, %v55_v22  ;;  %v72_v39 = vxor.u32 %v64_v31, %v56_v23 }
  0x13   :  { %v73_v40 = vxor.u32 %v65_v32, %v57_v24  ;;  %v74_v41 = vxor.u32 %v66_v33, %v58_v25  ;;  %v75_v42 = vxor.u32 %v67_v34, %v59_v26  ;;  %v76_v43 = vxor.u32 %v68_v35, %v60_v27 }
  0x14   :  { %v77_v44 = vmul.u32 2146121005, %v69_v36  ;;  %v78_v45 = vmul.u32 2146121005, %v70_v37  ;;  %v79_v46 = vmul.u32 2146121005, %v71_v38 }
  0x15   :  { %v80_v47 = vmul.u32 2146121005, %v72_v39  ;;  %v81_v48 = vmul.u32 2146121005, %v73_v40  ;;  %v82_v49 = vmul.u32 2146121005, %v74_v41 }
  0x16   :  { %v83_v50 = vmul.u32 2146121005, %v75_v42  ;;  %v84_v51 = vmul.u32 2146121005, %v76_v43  ;;  %v85_v52 = vshrl.u32 %v77_v44, 15  ;;  %v86_v53 = vshrl.u32 %v78_v45, 15 }
  0x17   :  { %v87_v54 = vshrl.u32 %v79_v46, 15  ;;  %v88_v55 = vshrl.u32 %v80_v47, 15  ;;  %v89_v56 = vshrl.u32 %v81_v48, 15  ;;  %v90_v57 = vshrl.u32 %v82_v49, 15 }
  0x18   :  { %v91_v58 = vshrl.u32 %v83_v50, 15  ;;  %v92_v59 = vshrl.u32 %v84_v51, 15  ;;  %v93_v60 = vxor.u32 %v85_v52, %v77_v44  ;;  %v94_v61 = vxor.u32 %v86_v53, %v78_v45 }
  0x19   :  { %v95_v62 = vxor.u32 %v87_v54, %v79_v46  ;;  %v96_v63 = vxor.u32 %v88_v55, %v80_v47  ;;  %v97_v0 = vxor.u32 %v89_v56, %v81_v48  ;;  %v98_v1 = vxor.u32 %v90_v57, %v82_v49 }
  0x1a   :  { %v99_v2 = vxor.u32 %v91_v58, %v83_v50  ;;  %v100_v3 = vxor.u32 %v92_v59, %v84_v51  ;;  %v101_v4 = vmul.u32 2221713035, %v93_v60  ;;  %v102_v5 = vmul.u32 2221713035, %v94_v61 }
  0x1b   :  { %v103_v6 = vmul.u32 2221713035, %v95_v62  ;;  %v104_v7 = vmul.u32 2221713035, %v96_v63  ;;  %v105_v8 = vmul.u32 2221713035, %v97_v0 }
  0x1c   :  { %v106_v9 = vmul.u32 2221713035, %v98_v1  ;;  %v107_v10 = vmul.u32 2221713035, %v99_v2  ;;  %v108_v11 = vmul.u32 2221713035, %v100_v3 }
  0x1d   :  { %v109_v12 = vshrl.u32 %v101_v4, 16  ;;  %v110_v13 = vshrl.u32 %v102_v5, 16  ;;  %v111_v14 = vshrl.u32 %v103_v6, 16  ;;  %v112_v15 = vshrl.u32 %v104_v7, 16 }
  0x1e   :  { %v113_v16 = vshrl.u32 %v105_v8, 16  ;;  %v114_v17 = vshrl.u32 %v106_v9, 16  ;;  %v115_v18 = vshrl.u32 %v107_v10, 16  ;;  %v116_v19 = vshrl.u32 %v108_v11, 16 }
  0x1f   :  { %v117_v20 = vxor.u32 %v109_v12, %v101_v4  ;;  %v118_v21 = vxor.u32 %v110_v13, %v102_v5  ;;  %v119_v22 = vxor.u32 %v111_v14, %v103_v6  ;;  %v120_v23 = vxor.u32 %v112_v15, %v104_v7 }
  0x20   :  { %v121_v24 = vxor.u32 %v113_v16, %v105_v8  ;;  %v122_v25 = vxor.u32 %v114_v17, %v106_v9  ;;  %v123_v26 = vxor.u32 %v115_v18, %v107_v10  ;;  %v124_v27 = vxor.u32 %v116_v19, %v108_v11 }
  0x21   :  { %v125_v28 = vshrl.u32 %v117_v20, 9  ;;  %v126_v29 = vshrl.u32 %v118_v21, 9  ;;  %v127_v30 = vshrl.u32 %v119_v22, 9  ;;  %v128_v31 = vshrl.u32 %v120_v23, 9 }
  0x22   :  { %v129_v32 = vshrl.u32 %v121_v24, 9  ;;  %v130_v33 = vshrl.u32 %v122_v25, 9  ;;  %v131_v34 = vshrl.u32 %v123_v26, 9  ;;  %v132_v35 = vshrl.u32 %v124_v27, 9 }
  0x23   :  { %v133_v36 = vcvt.s32.f32 %v125_v28  ;;  %v134_v37 = vcvt.s32.f32 %v126_v29  ;;  %v135_v38 = vcvt.s32.f32 %v127_v30  ;;  %v136_v39 = vcvt.s32.f32 %v128_v31 }
  0x24   :  { %v137_v40 = vcvt.s32.f32 %v129_v32  ;;  %v138_v41 = vcvt.s32.f32 %v130_v33  ;;  %v139_v42 = vcvt.s32.f32 %v131_v34  ;;  %v140_v43 = vcvt.s32.f32 %v132_v35 }
  0x25   :  { %v141_v44 = vadd.f32 0.5, %v133_v36  ;;  %v142_v45 = vadd.f32 0.5, %v134_v37  ;;  %v143_v46 = vadd.f32 0.5, %v135_v38  ;;  %v144_v47 = vadd.f32 0.5, %v136_v39 }
  0x26   :  { %v145_v48 = vadd.f32 0.5, %v137_v40  ;;  %v146_v49 = vadd.f32 0.5, %v138_v41  ;;  %v147_v50 = vadd.f32 0.5, %v139_v42  ;;  %v148_v51 = vadd.f32 0.5, %v140_v43 }
  0x27   :  { %v149_v52 = vmul.f32 1.1920929e-07, %v141_v44  ;;  %v150_v53 = vmul.f32 1.1920929e-07, %v142_v45  ;;  %v151_v54 = vmul.f32 1.1920929e-07, %v143_v46  ;;  %v152_v55 = vmul.f32 1.1920929e-07, %v144_v47 }
  0x28   :  { %v153_v56 = vmul.f32 1.1920929e-07, %v145_v48  ;;  %v154_v57 = vmul.f32 1.1920929e-07, %v146_v49  ;;  %v155_v58 = vmul.f32 1.1920929e-07, %v147_v50  ;;  %v156_v59 = vmul.f32 1.1920929e-07, %v148_v51 }
  0x29   :  { %v157_v60 = vmul.f32 2.0, %v149_v52  ;;  %v158_v61 = vmul.f32 2.0, %v150_v53  ;;  %v159_v62 = vmul.f32 2.0, %v151_v54  ;;  %v160_v63 = vmul.f32 2.0, %v152_v55 }
  0x2a   :  { %v161_v0 = vmul.f32 2.0, %v153_v56  ;;  %v162_v1 = vmul.f32 2.0, %v154_v57  ;;  %v163_v2 = vmul.f32 2.0, %v155_v58  ;;  %v164_v7 = vmul.f32 2.0, %v156_v59 }
  0x2b   :  { %v860_v3 = vadd.f32 -1.0, %v157_v60  ;;  %v862_v4 = vadd.f32 -1.0, %v158_v61  ;;  %v864_v5 = vadd.f32 -1.0, %v159_v62  ;;  %v866_v6 = vadd.f32 -1.0, %v160_v63 }
  0x2c   :  { %v868_v8 = vadd.f32 -1.0, %v161_v0  ;;  %v870_v9 = vadd.f32 -1.0, %v162_v1  ;;  %v876_v14 = vadd.f32 -1.0, %v163_v2  ;;  %v883_v20 = vadd.f32 -1.0, %v164_v7 }
  0x2d   :  { %v173_v10 = vsub.f32 0.0, %v860_v3  ;;  %v174_v11 = vsub.f32 0.0, %v862_v4  ;;  %v175_v12 = vsub.f32 0.0, %v864_v5  ;;  %v176_v13 = vsub.f32 0.0, %v866_v6 }
  0x2e   :  { %v177_v15 = vsub.f32 0.0, %v868_v8  ;;  %v178_v19 = vsub.f32 0.0, %v870_v9  ;;  %v179_v25 = vsub.f32 0.0, %v876_v14  ;;  %v180_v29 = vsub.f32 0.0, %v883_v20 }
  0x2f   :  { %v181_v16 = vmul.f32 %v860_v3, %v173_v10  ;;  %v182_v17 = vmul.f32 %v862_v4, %v174_v11  ;;  %v183_v18 = vmul.f32 %v864_v5, %v175_v12  ;;  %v184_v21 = vmul.f32 %v866_v6, %v176_v13 }
  0x30   :  { %v888_v26 = vmul.f32 %v868_v8, %v177_v15  ;;  %v891_v28 = vmul.f32 %v870_v9, %v178_v19  ;;  %v895_v35 = vmul.f32 %v876_v14, %v179_v25  ;;  %v188_v42 = vmul.f32 %v883_v20, %v180_v29 }
  0x31   :  { %v189_v22 = vadd.f32 1.0, %v181_v16  ;;  %v198_v23 = vadd.f32 1.0, %v182_v17  ;;  %v207_v24 = vadd.f32 1.0, %v183_v18  ;;  %v192_v27 = vmul.f32 -0.5, %v181_v16 }
  0x32   :  { %v195_v30 = vand.u32 2147483647, %v181_v16  ;;  %v201_v31 = vmul.f32 -0.5, %v182_v17  ;;  %v216_v32 = vadd.f32 1.0, %v184_v21  ;;  %v204_v33 = vand.u32 2147483647, %v182_v17 }
  0x33   :  { %744 = vlog2.f32 %v189_v22  ;;  %v210_v34 = vmul.f32 -0.5, %v183_v18  ;;  %v193_v36 = vadd.f32 1.0, %v192_v27  ;;  %v225_v37 = vadd.f32 1.0, %v888_v26 }
  0x34   :  { %746 = vlog2.f32 %v198_v23  ;;  %v213_v38 = vand.u32 2147483647, %v183_v18  ;;  %v219_v39 = vmul.f32 -0.5, %v184_v21  ;;  %v234_v40 = vadd.f32 1.0, %v891_v28 }
  0x35   :  { %748 = vlog2.f32 %v207_v24  ;;  %vm900_vm0 = vcmp.lt.f32.partialorder %v195_v30, 0.0004427343  ;;  %v202_v44 = vadd.f32 1.0, %v201_v31  ;;  %vm904_vm1 = vcmp.lt.f32.partialorder %v204_v33, 0.0004427343 }
  0x36   :  { %750 = vlog2.f32 %v216_v32  ;;  %v211_v47 = vadd.f32 1.0, %v210_v34  ;;  %v228_v48 = vmul.f32 -0.5, %v888_v26  ;;  %v194_v49 = vmul.f32 %v193_v36, %v181_v16 }
  0x37   :  { %752 = vlog2.f32 %v225_v37  ;;  %v222_v50 = vand.u32 2147483647, %v184_v21  ;;  %v237_v51 = vmul.f32 -0.5, %v891_v28  ;;  %v243_v52 = vadd.f32 1.0, %v895_v35 }
  0x38   :  { %754 = vlog2.f32 %v234_v40  ;;  %vm911_vm2 = vcmp.lt.f32.partialorder %v213_v38, 0.0004427343  ;;  %v220_v56 = vadd.f32 1.0, %v219_v39  ;;  %v246_v57 = vmul.f32 -0.5, %v895_v35 }
  0x39   :  { %v745_v41 = vpop.eup %744  ;;  %v203_v59 = vmul.f32 %v202_v44, %v182_v17  ;;  %756 = vlog2.f32 %v243_v52  ;;  %v252_v60 = vadd.f32 1.0, %v188_v42  ;;  %v212_v62 = vmul.f32 %v211_v47, %v183_v18 }
  0x3a   :  { %v747_v45 = vpop.eup %746  ;;  %v191_v54 = vmul.f32 0.6931472, %v745_v41  ;;  %v229_v63 = vadd.f32 1.0, %v228_v48  ;;  %v231_v0 = vand.u32 2147483647, %v888_v26  ;;  %v255_v1 = vmul.f32 -0.5, %v188_v42 }
  0x3b   :  { %v749_v53 = vpop.eup %748  ;;  %v200_v58 = vmul.f32 0.6931472, %v747_v45  ;;  %vm917_vm3 = vcmp.lt.f32.partialorder %v222_v50, 0.0004427343  ;;  %v238_v11 = vadd.f32 1.0, %v237_v51  ;;  %758 = vlog2.f32 %v252_v60 }
  0x3c   :  { %v751_v61 = vpop.eup %750  ;;  %v209_v7 = vmul.f32 0.6931472, %v749_v53  ;;  %v197_v13 = vsel %vm900_vm0, %v194_v49, %v191_v54  ;;  %v221_v15 = vmul.f32 %v220_v56, %v184_v21  ;;  %v240_v16 = vand.u32 2147483647, %v891_v28 }
  0x3d   :  { %v753_v2 = vpop.eup %752  ;;  %v247_v17 = vadd.f32 1.0, %v246_v57  ;;  %v206_v18 = vsel %vm904_vm1, %v203_v59, %v200_v58  ;;  %v218_v19 = vmul.f32 0.6931472, %v751_v61  ;;  %v249_v22 = vand.u32 2147483647, %v895_v35 }
  0x3e   :  { %v755_v12 = vpop.eup %754  ;;  %v256_v23 = vadd.f32 1.0, %v255_v1  ;;  %v227_v24 = vmul.f32 0.6931472, %v753_v2  ;;  %v230_v25 = vmul.f32 %v229_v63, %v888_v26  ;;  %vm928_vm4 = vcmp.lt.f32.partialorder %v231_v0, 0.0004427343 }
  0x3f   :  { %v258_v29 = vand.u32 2147483647, %v188_v42  ;;  %v757_v30 = vpop.eup %756  ;;  %v215_v21 = vsel %vm911_vm2, %v212_v62, %v209_v7  ;;  %v236_v31 = vmul.f32 0.6931472, %v755_v12  ;;  %v239_v32 = vmul.f32 %v238_v11, %v891_v28 }
  0x40   :  { %v935_v33 = vsub.f32 0.0, %v197_v13  ;;  %vm937_vm5 = vcmp.lt.f32.partialorder %v240_v16, 0.0004427343  ;;  %v245_v36 = vmul.f32 0.6931472, %v757_v30  ;;  %v248_v26 = vmul.f32 %v247_v17, %v895_v35 }
  0x41   :  { %v942_v37 = vsub.f32 0.0, %v206_v18  ;;  %v759_v38 = vpop.eup %758  ;;  %v224_v39 = vsel %vm917_vm3, %v221_v15, %v218_v19  ;;  %vm946_vm6 = vcmp.lt.f32.partialorder %v249_v22, 0.0004427343  ;;  %v257_v28 = vmul.f32 %v256_v23, %v188_v42 }
  0x42   :  { %v233_v41 = vsel %vm928_vm4, %v230_v25, %v227_v24  ;;  %v254_v43 = vmul.f32 0.6931472, %v759_v38  ;;  %vm952_vm7 = vcmp.lt.f32.partialorder %v258_v29, 0.0004427343  ;;  %v956_v35 = vsub.f32 0.0, %v215_v21 }
  0x43   :  { %v242_v45 = vsel %vm937_vm5, %v239_v32, %v236_v31  ;;  %760 = vrsqrt.f32 %v935_v33  ;;  %v251_v46 = vsel %vm946_vm6, %v248_v26, %v245_v36  ;;  %v963_v47 = vsub.f32 0.0, %v224_v39 }
  0x44   :  { %762 = vrsqrt.f32 %v942_v37  ;;  %v260_v42 = vsel %vm952_vm7, %v257_v28, %v254_v43  ;;  %v968_v48 = vsub.f32 0.0, %v233_v41  ;;  %vm269_vm8 = vcmp.lt.f32.partialorder %v935_v33, 5.0 }
  0x45   :  { %v971_v49 = vsub.f32 0.0, %v242_v45  ;;  %vm1457_vm9 = vcmp.lt.f32.partialorder %v942_v37, 5.0  ;;  %vm1456_vm10 = vcmp.lt.f32.partialorder %v956_v35, 5.0  ;;  %764 = vrsqrt.f32 %v956_v35 }
  0x46   :  { %v976_v50 = vsub.f32 0.0, %v251_v46  ;;  %vm1458_vm11 = vcmp.lt.f32.partialorder %v963_v47, 5.0  ;;  %v980_v51 = vadd.f32 -2.5, %v935_v33  ;;  %v983_v52 = vadd.f32 -2.5, %v942_v37 }
  0x47   :  { %v985_v53 = vsub.f32 0.0, %v260_v42  ;;  %v988_v54 = vadd.f32 -2.5, %v956_v35  ;;  %v991_v55 = vadd.f32 -2.5, %v963_v47  ;;  %766 = vrsqrt.f32 %v963_v47 }
  0x48   :  { %v995_v57 = vadd.f32 -2.5, %v968_v48  ;;  %v998_v58 = vadd.f32 -2.5, %v971_v49  ;;  %v295_v59 = vand.u32 2147483648, %v935_v33  ;;  %768 = vrsqrt.f32 %v968_v48 }
  0x49   :  { %v761_v56 = vpop.eup %760  ;;  %v1003_v61 = vadd.f32 -2.5, %v976_v50  ;;  %v307_v63 = vand.u32 2147483648, %v942_v37  ;;  %770 = vrsqrt.f32 %v971_v49  ;;  %v1009_v0 = vadd.f32 -2.5, %v985_v53 }
  0x4a   :  { %v763_v60 = vpop.eup %762  ;;  %v286_v62 = vmul.f32 %v761_v56, %v935_v33  ;;  %vm292_vm12 = vcmp.eq.f32.partialorder %v935_v33, inf  ;;  %v319_v2 = vand.u32 2147483648, %v956_v35  ;;  %772 = vrsqrt.f32 %v976_v50 }
  0x4b   :  { %v298_v1 = vmul.f32 %v763_v60, %v942_v37  ;;  %v765_v7 = vpop.eup %764  ;;  %vm294_vm13 = vcmp.eq.f32.partialorder %v935_v33, 0.0  ;;  %vm304_vm14 = vcmp.eq.f32.partialorder %v942_v37, inf  ;;  %v331_v11 = vand.u32 2147483648, %v963_v47 }
  0x4c   :  { %v287_v10 = vmul.f32 %v761_v56, %v286_v62  ;;  %v343_v12 = vand.u32 2147483648, %v968_v48  ;;  %774 = vrsqrt.f32 %v985_v53  ;;  %vm306_vm15 = vcmp.eq.f32.partialorder %v942_v37, 0.0 }
  0x4d   :  { %v299_v13 = vmul.f32 %v763_v60, %v298_v1  ;;  %v310_v15 = vmul.f32 %v765_v7, %v956_v35  ;;  %v355_v16 = vand.u32 2147483648, %v971_v49  ;;  %v367_v17 = vand.u32 2147483648, %v976_v50  ;;  %v767_v18 = vpop.eup %766 }
  0x4e   :  { %v288_v19 = vmul.f32 0.5, %v287_v10  ;;  %vm316_vm0 = vcmp.eq.f32.partialorder %v956_v35, inf  ;;  %v379_v22 = vand.u32 2147483648, %v985_v53  ;;  %v769_v23 = vpop.eup %768  ;;  %vm318_vm1 = vcmp.eq.f32.partialorder %v956_v35, 0.0 }
  0x4f   :  { %v300_v24 = vmul.f32 0.5, %v299_v13  ;;  %v311_v25 = vmul.f32 %v765_v7, %v310_v15  ;;  %v322_v27 = vmul.f32 %v767_v18, %v963_v47  ;;  %v829_v29 = vmov -0.00020021426   ;;  %v771_v21 = vpop.eup %770 }
  0x50   :  { %v1031_v30 = vsel %vm269_vm8, 2.8102264e-08, %v829_v29  ;;  %v289_v31 = vsub.f32 1.5, %v288_v19  ;;  %vm328_vm2 = vcmp.eq.f32.partialorder %v963_v47, inf  ;;  %v334_v32 = vmul.f32 %v769_v23, %v968_v48  ;;  %v773_v26 = vpop.eup %772 }
  0x51   :  { %v1038_v34 = vsel %vm1457_vm9, 2.8102264e-08, %v829_v29  ;;  %v1043_v36 = vsel %vm1456_vm10, 2.8102264e-08, %v829_v29  ;;  %v301_v38 = vsub.f32 1.5, %v300_v24  ;;  %v312_v39 = vmul.f32 0.5, %v311_v25 }
  0x52   :  { %v323_v40 = vmul.f32 %v767_v18, %v322_v27  ;;  %vm330_vm3 = vcmp.eq.f32.partialorder %v963_v47, 0.0  ;;  %vm340_vm4 = vcmp.eq.f32.partialorder %v968_v48, inf  ;;  %v346_v28 = vmul.f32 %v771_v21, %v971_v49  ;;  %v775_v41 = vpop.eup %774 }
  0x53   :  { %v290_v43 = vmul.f32 %v761_v56, %v289_v31  ;;  %v335_v44 = vmul.f32 %v769_v23, %v334_v32  ;;  %vm342_vm5 = vcmp.eq.f32.partialorder %v968_v48, 0.0  ;;  %v358_v45 = vmul.f32 %v773_v26, %v976_v50 }
  0x54   :  { %v1053_v46 = vsel %vm1458_vm11, 2.8102264e-08, %v829_v29  ;;  %v302_v42 = vmul.f32 %v763_v60, %v301_v38  ;;  %v313_v62 = vsub.f32 1.5, %v312_v39  ;;  %v324_v1 = vmul.f32 0.5, %v323_v40 }
  0x55   :  { %v347_v10 = vmul.f32 %v771_v21, %v346_v28  ;;  %v291_v56 = vmul.f32 %v290_v43, %v935_v33  ;;  %v336_v13 = vmul.f32 0.5, %v335_v44  ;;  %vm354_vm10 = vcmp.eq.f32.partialorder %v971_v49, 0.0 }
  0x56   :  { %v359_v15 = vmul.f32 %v773_v26, %v358_v45  ;;  %v370_v19 = vmul.f32 %v775_v41, %v985_v53  ;;  %v303_v60 = vmul.f32 %v302_v42, %v942_v37  ;;  %v314_v24 = vmul.f32 %v765_v7, %v313_v62 }
  0x57   :  { %v325_v25 = vsub.f32 1.5, %v324_v1  ;;  %v348_v27 = vmul.f32 0.5, %v347_v10  ;;  %vm274_vm6 = vcmp.lt.f32.partialorder %v971_v49, 5.0  ;;  %vm275_vm7 = vcmp.lt.f32.partialorder %v976_v50, 5.0 }
  0x58   :  { %v293_v31 = vsel %vm292_vm12, %v935_v33, %v291_v56  ;;  %v337_v32 = vsub.f32 1.5, %v336_v13  ;;  %v360_v38 = vmul.f32 0.5, %v359_v15  ;;  %v371_v39 = vmul.f32 %v775_v41, %v370_v19 }
  0x59   :  { %vm376_vm9 = vcmp.eq.f32.partialorder %v985_v53, inf  ;;  %vm276_vm11 = vcmp.lt.f32.partialorder %v985_v53, 5.0  ;;  %v296_v7 = vsel %vm294_vm13, %v295_v59, %v293_v31  ;;  %v305_v40 = vsel %vm304_vm14, %v942_v37, %v303_v60 }
  0x5a   :  { %v315_v28 = vmul.f32 %v314_v24, %v956_v35  ;;  %v326_v43 = vmul.f32 %v767_v18, %v325_v25  ;;  %vm378_vm12 = vcmp.eq.f32.partialorder %v985_v53, 0.0  ;;  %v308_v44 = vsel %vm306_vm15, %v307_v63, %v305_v40 }
  0x5b   :  { %v338_v45 = vmul.f32 %v769_v23, %v337_v32  ;;  %v349_v42 = vsub.f32 1.5, %v348_v27  ;;  %v361_v62 = vsub.f32 1.5, %v360_v38  ;;  %v372_v10 = vmul.f32 0.5, %v371_v39 }
  0x5c   :  { %v317_v59 = vsel %vm316_vm0, %v956_v35, %v315_v28  ;;  %v327_v1 = vmul.f32 %v326_v43, %v963_v47  ;;  %v725_v56 = vadd.f32 -3.0, %v296_v7  ;;  %v726_v60 = vadd.f32 -3.0, %v308_v44 }
  0x5d   :  { %v320_v18 = vsel %vm318_vm1, %v319_v2, %v317_v59  ;;  %v339_v13 = vmul.f32 %v338_v45, %v968_v48  ;;  %v350_v15 = vmul.f32 %v771_v21, %v349_v42  ;;  %v362_v63 = vmul.f32 %v773_v26, %v361_v62 }
  0x5e   :  { %v329_v23 = vsel %vm328_vm2, %v963_v47, %v327_v1  ;;  %v373_v19 = vsub.f32 1.5, %v372_v10  ;;  %v727_v24 = vadd.f32 -3.0, %v320_v18  ;;  %v1111_v38 = vsel %vm269_vm8, %v980_v51, %v725_v56 }
  0x5f   :  { %v332_v25 = vsel %vm330_vm3, %v331_v11, %v329_v23  ;;  %v341_v2 = vsel %vm340_vm4, %v968_v48, %v339_v13  ;;  %v351_v27 = vmul.f32 %v350_v15, %v971_v49  ;;  %v363_v21 = vmul.f32 %v362_v63, %v976_v50 }
  0x60   :  { %v344_v26 = vsel %vm342_vm5, %v343_v12, %v341_v2  ;;  %v374_v31 = vmul.f32 %v775_v41, %v373_v19  ;;  %v728_v32 = vadd.f32 -3.0, %v332_v25  ;;  %vm1475_vm13 = vcmp.eq.f32.partialorder %v971_v49, inf }
  0x61   :  { %v353_v11 = vsel %vm1475_vm13, %v971_v49, %v351_v27  ;;  %vm1476_vm14 = vcmp.eq.f32.partialorder %v976_v50, inf  ;;  %v729_v7 = vadd.f32 -3.0, %v344_v26  ;;  %vm1477_vm15 = vcmp.lt.f32.partialorder %v942_v37, 5.0 }
  0x62   :  { %v365_v39 = vsel %vm1476_vm14, %v976_v50, %v363_v21  ;;  %v1122_v12 = vsel %vm1477_vm15, %v983_v52, %v726_v60  ;;  %v356_v51 = vsel %vm354_vm10, %v355_v16, %v353_v11  ;;  %vm1478_vm0 = vcmp.eq.f32.partialorder %v976_v50, 0.0 }
  0x63   :  { %v368_v41 = vsel %vm1478_vm0, %v367_v17, %v365_v39  ;;  %v375_v40 = vmul.f32 %v374_v31, %v985_v53  ;;  %vm1479_vm1 = vcmp.lt.f32.partialorder %v956_v35, 5.0  ;;  %v730_v43 = vadd.f32 -3.0, %v356_v51 }
  0x64   :  { %v1136_v28 = vsel %vm1479_vm1, %v988_v54, %v727_v24  ;;  %v731_v52 = vadd.f32 -3.0, %v368_v41  ;;  %vm1480_vm2 = vcmp.lt.f32.partialorder %v963_v47, 5.0  ;;  %vm1481_vm10 = vcmp.lt.f32.partialorder %v968_v48, 5.0  ;;  %vm1484_vm4 = vmmov %vm1479_vm1 }
  0x65   :  { %v1141_v44 = vsel %vm1480_vm2, %v991_v55, %v728_v32  ;;  %v1146_v16 = vsel %vm1481_vm10, %v995_v57, %v729_v7  ;;  %v377_v17 = vsel %vm376_vm9, %v985_v53, %v375_v40  ;;  %vm1482_vm3 = vmmov %vm1481_vm10  ;;  %v402_v45 = vsel %vm274_vm6, 2.8102264e-08, %v829_v29 }
  0x66   :  { %v401_v54 = vsel %vm1482_vm3, 2.8102264e-08, %v829_v29  ;;  %v403_v55 = vsel %vm275_vm7, 2.8102264e-08, %v829_v29  ;;  %v380_v57 = vsel %vm378_vm12, %v379_v22, %v377_v17  ;;  %v1167_v42 = vsel %vm274_vm6, %v998_v58, %v730_v43  ;;  %vm1483_vm9 = vmmov %vm1477_vm15 }
  0x67   :  { %v1172_v62 = vsel %vm275_vm7, %v1003_v61, %v731_v52  ;;  %v404_v59 = vsel %vm276_vm11, 2.8102264e-08, %v829_v29  ;;  %v732_v1 = vadd.f32 -3.0, %v380_v57  ;;  %v830_v10 = vmov 0.00010095056   ;;  %vm1485_vm5 = vmmov %vm1480_vm2 }
  0x68   :  { %v405_v56 = vsel %vm269_vm8, 3.4327394e-07, %v830_v10  ;;  %v406_v22 = vsel %vm1483_vm9, 3.4327394e-07, %v830_v10  ;;  %v413_v58 = vmul.f32 %v1031_v30, %v1111_v38  ;;  %v407_v18 = vsel %vm1484_vm4, 3.4327394e-07, %v830_v10  ;;  %vm1486_vm12 = vmmov %vm1482_vm3 }
  0x69   :  { %v408_v61 = vsel %vm1485_vm5, 3.4327394e-07, %v830_v10  ;;  %v409_v29 = vsel %vm1486_vm12, 3.4327394e-07, %v830_v10  ;;  %v414_v13 = vmul.f32 %v1038_v34, %v1122_v12  ;;  %v1194_v15 = vsel %vm276_vm11, %v1009_v0, %v732_v1  ;;  %vm1487_vm13 = vmmov %vm1483_vm9 }
  0x6a   :  { %v410_v30 = vsel %vm274_vm6, 3.4327394e-07, %v830_v10  ;;  %v411_v63 = vsel %vm275_vm7, 3.4327394e-07, %v830_v10  ;;  %v412_v23 = vsel %vm276_vm11, 3.4327394e-07, %v830_v10  ;;  %v415_v19 = vmul.f32 %v1043_v36, %v1136_v28  ;;  %vm1488_vm14 = vmmov %vm1479_vm1 }
  0x6b   :  { %v416_v34 = vmul.f32 %v1053_v46, %v1141_v44  ;;  %v417_v60 = vmul.f32 %v401_v54, %v1146_v16  ;;  %v418_v0 = vmul.f32 %v402_v45, %v1167_v42  ;;  %v419_v24 = vmul.f32 %v403_v55, %v1172_v62  ;;  %vm1489_vm15 = vmmov %vm1480_vm2 }
  0x6c   :  { %v420_v25 = vmul.f32 %v404_v59, %v1194_v15  ;;  %v421_v2 = vadd.f32 %v413_v58, %v405_v56  ;;  %v422_v27 = vadd.f32 %v414_v13, %v406_v22  ;;  %v423_v21 = vadd.f32 %v415_v19, %v407_v18  ;;  %vm1490_vm0 = vmmov %vm1482_vm3 }
  0x6d   :  { %v424_v26 = vadd.f32 %v416_v34, %v408_v61  ;;  %v425_v31 = vadd.f32 %v417_v60, %v409_v29  ;;  %v426_v32 = vadd.f32 %v418_v0, %v410_v30  ;;  %v427_v11 = vadd.f32 %v419_v24, %v411_v63  ;;  %vm1491_vm1 = vmmov %vm1483_vm9 }
  0x6e   :  { %v428_v39 = vadd.f32 %v420_v25, %v412_v23  ;;  %v437_v36 = vmul.f32 %v421_v2, %v1111_v38  ;;  %v831_v7 = vmov 0.0013493432   ;;  %v438_v40 = vmul.f32 %v422_v27, %v1122_v12  ;;  %vm1492_vm2 = vmmov %vm1484_vm4 }
  0x6f   :  { %v429_v46 = vsel %vm269_vm8, -3.5233877e-06, %v831_v7  ;;  %v430_v51 = vsel %vm1487_vm13, -3.5233877e-06, %v831_v7  ;;  %v431_v41 = vsel %vm1488_vm14, -3.5233877e-06, %v831_v7  ;;  %v439_v54 = vmul.f32 %v423_v21, %v1136_v28  ;;  %vm1493_vm10 = vmmov %vm1485_vm5 }
  0x70   :  { %v432_v43 = vsel %vm1489_vm15, -3.5233877e-06, %v831_v7  ;;  %v433_v52 = vsel %vm1490_vm0, -3.5233877e-06, %v831_v7  ;;  %v434_v17 = vsel %vm274_vm6, -3.5233877e-06, %v831_v7  ;;  %v440_v57 = vmul.f32 %v424_v26, %v1141_v44  ;;  %vm1494_vm3 = vmmov %vm1490_vm0 }
  0x71   :  { %v435_v45 = vsel %vm275_vm7, -3.5233877e-06, %v831_v7  ;;  %v436_v55 = vsel %vm276_vm11, -3.5233877e-06, %v831_v7  ;;  %v441_v59 = vmul.f32 %v425_v31, %v1146_v16  ;;  %v442_v1 = vmul.f32 %v426_v32, %v1167_v42  ;;  %vm1495_vm9 = vmmov %vm1491_vm1 }
  0x72   :  { %v443_v10 = vmul.f32 %v427_v11, %v1172_v62  ;;  %v444_v56 = vmul.f32 %v428_v39, %v1194_v15  ;;  %v445_v22 = vadd.f32 %v437_v36, %v429_v46  ;;  %v446_v58 = vadd.f32 %v438_v40, %v430_v51  ;;  %vm1496_vm4 = vmmov %vm1492_vm2 }
  0x73   :  { %v447_v18 = vadd.f32 %v439_v54, %v431_v41  ;;  %v448_v61 = vadd.f32 %v440_v57, %v432_v43  ;;  %v449_v29 = vadd.f32 %v441_v59, %v433_v52  ;;  %v450_v13 = vadd.f32 %v442_v1, %v434_v17  ;;  %vm1497_vm12 = vmmov %vm1490_vm0 }
  0x74   :  { %v451_v30 = vadd.f32 %v443_v10, %v435_v45  ;;  %v452_v63 = vadd.f32 %v444_v56, %v436_v55  ;;  %v832_v23 = vmov -0.0036734284   ;;  %v461_v0 = vmul.f32 %v445_v22, %v1111_v38  ;;  %vm1498_vm13 = vmmov %vm1491_vm1 }
  0x75   :  { %v453_v19 = vsel %vm269_vm8, -4.3915065e-06, %v832_v23  ;;  %v454_v34 = vsel %vm1491_vm1, -4.3915065e-06, %v832_v23  ;;  %v455_v60 = vsel %vm1492_vm2, -4.3915065e-06, %v832_v23  ;;  %v462_v27 = vmul.f32 %v446_v58, %v1122_v12  ;;  %vm1499_vm14 = vmmov %vm1492_vm2 }
  0x76   :  { %v456_v24 = vsel %vm1493_vm10, -4.3915065e-06, %v832_v23  ;;  %v457_v25 = vsel %vm1494_vm3, -4.3915065e-06, %v832_v23  ;;  %v458_v2 = vsel %vm274_vm6, -4.3915065e-06, %v832_v23  ;;  %v463_v31 = vmul.f32 %v447_v18, %v1136_v28  ;;  %vm1500_vm15 = vmmov %vm1485_vm5 }
  0x77   :  { %v459_v21 = vsel %vm275_vm7, -4.3915065e-06, %v832_v23  ;;  %v460_v26 = vsel %vm276_vm11, -4.3915065e-06, %v832_v23  ;;  %v464_v32 = vmul.f32 %v448_v61, %v1141_v44  ;;  %v465_v11 = vmul.f32 %v449_v29, %v1146_v16  ;;  %vm1501_vm10 = vmmov %vm1485_vm5 }
  0x78   :  { %v466_v39 = vmul.f32 %v450_v13, %v1167_v42  ;;  %v467_v36 = vmul.f32 %v451_v30, %v1172_v62  ;;  %v468_v7 = vmul.f32 %v452_v63, %v1194_v15  ;;  %v469_v46 = vadd.f32 %v461_v0, %v453_v19  ;;  %vm1502_vm3 = vmmov %vm1490_vm0 }
  0x79   :  { %v470_v51 = vadd.f32 %v462_v27, %v454_v34  ;;  %v471_v41 = vadd.f32 %v463_v31, %v455_v60  ;;  %v472_v40 = vadd.f32 %v464_v32, %v456_v24  ;;  %v473_v43 = vadd.f32 %v465_v11, %v457_v25 }
  0x7a   :  { %v474_v52 = vadd.f32 %v466_v39, %v458_v2  ;;  %v475_v17 = vadd.f32 %v467_v36, %v459_v21  ;;  %v476_v54 = vadd.f32 %v468_v7, %v460_v26  ;;  %v485_v45 = vmul.f32 %v469_v46, %v1111_v38 }
  0x7b   :  { %v486_v55 = vmul.f32 %v470_v51, %v1122_v12  ;;  %v487_v57 = vmul.f32 %v471_v41, %v1136_v28  ;;  %v833_v59 = vmov 0.0057395077   ;;  %v488_v22 = vmul.f32 %v472_v40, %v1141_v44 }
  0x7c   :  { %v477_v1 = vsel %vm269_vm8, 0.00021858087, %v833_v59  ;;  %v478_v10 = vsel %vm1495_vm9, 0.00021858087, %v833_v59  ;;  %v479_v56 = vsel %vm1496_vm4, 0.00021858087, %v833_v59  ;;  %v489_v29 = vmul.f32 %v473_v43, %v1146_v16  ;;  %vm1503_vm9 = vmmov %vm1491_vm1 }
  0x7d   :  { %v480_v58 = vsel %vm1485_vm5, 0.00021858087, %v833_v59  ;;  %v481_v18 = vsel %vm1497_vm12, 0.00021858087, %v833_v59  ;;  %v482_v61 = vsel %vm274_vm6, 0.00021858087, %v833_v59  ;;  %v490_v63 = vmul.f32 %v474_v52, %v1167_v42  ;;  %vm1504_vm4 = vmmov %vm1492_vm2 }
  0x7e   :  { %v483_v13 = vsel %vm275_vm7, 0.00021858087, %v833_v59  ;;  %v484_v30 = vsel %vm276_vm11, 0.00021858087, %v833_v59  ;;  %v491_v23 = vmul.f32 %v475_v17, %v1172_v62  ;;  %v492_v19 = vmul.f32 %v476_v54, %v1194_v15  ;;  %vm1505_vm12 = vmmov %vm1490_vm0 }
  0x7f   :  { %v493_v34 = vadd.f32 %v485_v45, %v477_v1  ;;  %v494_v60 = vadd.f32 %v486_v55, %v478_v10  ;;  %v495_v0 = vadd.f32 %v487_v57, %v479_v56  ;;  %v496_v24 = vadd.f32 %v488_v22, %v480_v58 }
  0x80   :  { %v497_v25 = vadd.f32 %v489_v29, %v481_v18  ;;  %v498_v2 = vadd.f32 %v490_v63, %v482_v61  ;;  %v499_v27 = vadd.f32 %v491_v23, %v483_v13  ;;  %v500_v21 = vadd.f32 %v492_v19, %v484_v30 }
  0x81   :  { %v509_v26 = vmul.f32 %v493_v34, %v1111_v38  ;;  %v510_v31 = vmul.f32 %v494_v60, %v1122_v12  ;;  %v834_v32 = vmov -0.0076224613   ;;  %v511_v7 = vmul.f32 %v495_v0, %v1136_v28 }
  0x82   :  { %v501_v11 = vsel %vm269_vm8, -0.001253725, %v834_v32  ;;  %v502_v39 = vsel %vm1498_vm13, -0.001253725, %v834_v32  ;;  %v503_v36 = vsel %vm1499_vm14, -0.001253725, %v834_v32  ;;  %v512_v40 = vmul.f32 %v496_v24, %v1141_v44  ;;  %vm1506_vm13 = vmmov %vm1491_vm1 }
  0x83   :  { %v504_v46 = vsel %vm1500_vm15, -0.001253725, %v834_v32  ;;  %v505_v51 = vsel %vm1490_vm0, -0.001253725, %v834_v32  ;;  %v506_v41 = vsel %vm274_vm6, -0.001253725, %v834_v32  ;;  %v513_v17 = vmul.f32 %v497_v25, %v1146_v16  ;;  %vm1507_vm14 = vmmov %vm1492_vm2 }
  0x84   :  { %v507_v43 = vsel %vm275_vm7, -0.001253725, %v834_v32  ;;  %v508_v52 = vsel %vm276_vm11, -0.001253725, %v834_v32  ;;  %v514_v54 = vmul.f32 %v498_v2, %v1167_v42  ;;  %v515_v45 = vmul.f32 %v499_v27, %v1172_v62  ;;  %vm1508_vm15 = vmmov %vm1485_vm5 }
  0x85   :  { %v516_v55 = vmul.f32 %v500_v21, %v1194_v15  ;;  %v517_v57 = vadd.f32 %v509_v26, %v501_v11  ;;  %v518_v59 = vadd.f32 %v510_v31, %v502_v39  ;;  %v519_v1 = vadd.f32 %v511_v7, %v503_v36 }
  0x86   :  { %v520_v10 = vadd.f32 %v512_v40, %v504_v46  ;;  %v521_v56 = vadd.f32 %v513_v17, %v505_v51  ;;  %v522_v22 = vadd.f32 %v514_v54, %v506_v41  ;;  %v523_v58 = vadd.f32 %v515_v45, %v507_v43 }
  0x87   :  { %v524_v18 = vadd.f32 %v516_v55, %v508_v52  ;;  %v533_v61 = vmul.f32 %v517_v57, %v1111_v38  ;;  %v835_v29 = vmov 0.0094388705   ;;  %v534_v23 = vmul.f32 %v518_v59, %v1122_v12 }
  0x88   :  { %v525_v13 = vsel %vm269_vm8, -0.0041776816, %v835_v29  ;;  %v526_v30 = vsel %vm1491_vm1, -0.0041776816, %v835_v29  ;;  %v527_v63 = vsel %vm1492_vm2, -0.0041776816, %v835_v29  ;;  %v535_v0 = vmul.f32 %v519_v1, %v1136_v28 }
  0x89   :  { %v528_v19 = vsel %vm1501_vm10, -0.0041776816, %v835_v29  ;;  %v529_v34 = vsel %vm1502_vm3, -0.0041776816, %v835_v29  ;;  %v530_v60 = vsel %vm274_vm6, -0.0041776816, %v835_v29  ;;  %v536_v2 = vmul.f32 %v520_v10, %v1141_v44 }
  0x8a   :  { %v531_v24 = vsel %vm275_vm7, -0.0041776816, %v835_v29  ;;  %v532_v25 = vsel %vm276_vm11, -0.0041776816, %v835_v29  ;;  %v537_v27 = vmul.f32 %v521_v56, %v1146_v16  ;;  %v538_v21 = vmul.f32 %v522_v22, %v1167_v42 }
  0x8b   :  { %v539_v26 = vmul.f32 %v523_v58, %v1172_v62  ;;  %v540_v31 = vmul.f32 %v524_v18, %v1194_v15  ;;  %v541_v32 = vadd.f32 %v533_v61, %v525_v13  ;;  %v542_v11 = vadd.f32 %v534_v23, %v526_v30 }
  0x8c   :  { %v543_v39 = vadd.f32 %v535_v0, %v527_v63  ;;  %v544_v36 = vadd.f32 %v536_v2, %v528_v19  ;;  %v545_v7 = vadd.f32 %v537_v27, %v529_v34  ;;  %v546_v46 = vadd.f32 %v538_v21, %v530_v60 }
  0x8d   :  { %v547_v51 = vadd.f32 %v539_v26, %v531_v24  ;;  %v548_v41 = vadd.f32 %v540_v31, %v532_v25  ;;  %v836_v40 = vmov 1.001674   ;;  %v557_v54 = vmul.f32 %v541_v32, %v1111_v38 }
  0x8e   :  { %v549_v43 = vsel %vm269_vm8, 0.24664073, %v836_v40  ;;  %v550_v52 = vsel %vm1503_vm9, 0.24664073, %v836_v40  ;;  %v551_v17 = vsel %vm1504_vm4, 0.24664073, %v836_v40  ;;  %v558_v59 = vmul.f32 %v542_v11, %v1122_v12 }
  0x8f   :  { %v552_v45 = vsel %vm1485_vm5, 0.24664073, %v836_v40  ;;  %v553_v55 = vsel %vm1505_vm12, 0.24664073, %v836_v40  ;;  %v554_v57 = vsel %vm274_vm6, 0.24664073, %v836_v40  ;;  %v559_v56 = vmul.f32 %v543_v39, %v1136_v28 }
  0x90   :  { %v555_v1 = vsel %vm275_vm7, 0.24664073, %v836_v40  ;;  %v556_v10 = vsel %vm276_vm11, 0.24664073, %v836_v40  ;;  %v560_v22 = vmul.f32 %v544_v36, %v1141_v44  ;;  %v561_v58 = vmul.f32 %v545_v7, %v1146_v16 }
  0x91   :  { %v562_v18 = vmul.f32 %v546_v46, %v1167_v42  ;;  %v563_v61 = vmul.f32 %v547_v51, %v1172_v62  ;;  %v564_v29 = vmul.f32 %v548_v41, %v1194_v15  ;;  %v565_v13 = vadd.f32 %v557_v54, %v549_v43 }
  0x92   :  { %v566_v30 = vadd.f32 %v558_v59, %v550_v52  ;;  %v567_v63 = vadd.f32 %v559_v56, %v551_v17  ;;  %v568_v23 = vadd.f32 %v560_v22, %v552_v45  ;;  %v569_v19 = vadd.f32 %v561_v58, %v553_v55 }
  0x93   :  { %v570_v34 = vadd.f32 %v562_v18, %v554_v57  ;;  %v571_v60 = vadd.f32 %v563_v61, %v555_v1  ;;  %v572_v0 = vadd.f32 %v564_v29, %v556_v10  ;;  %v581_v24 = vmul.f32 %v565_v13, %v1111_v38 }
  0x94   :  { %v582_v25 = vmul.f32 %v566_v30, %v1122_v12  ;;  %v583_v2 = vmul.f32 %v567_v63, %v1136_v28  ;;  %v837_v27 = vmov 2.8329768   ;;  %v584_v32 = vmul.f32 %v568_v23, %v1141_v44 }
  0x95   :  { %v573_v21 = vsel %vm269_vm8, 1.5014094, %v837_v27  ;;  %v574_v26 = vsel %vm1506_vm13, 1.5014094, %v837_v27  ;;  %v575_v31 = vsel %vm1507_vm14, 1.5014094, %v837_v27  ;;  %v585_v33 = vmul.f32 %v569_v19, %v1146_v16 }
  0x96   :  { %v576_v11 = vsel %vm1508_vm15, 1.5014094, %v837_v27  ;;  %v577_v38 = vsel %vm1490_vm0, 1.5014094, %v837_v27  ;;  %v578_v12 = vsel %vm274_vm6, 1.5014094, %v837_v27  ;;  %v586_v28 = vmul.f32 %v570_v34, %v1167_v42 }
  0x97   :  { %v579_v37 = vsel %vm275_vm7, 1.5014094, %v837_v27  ;;  %v580_v35 = vsel %vm276_vm11, 1.5014094, %v837_v27  ;;  %v587_v44 = vmul.f32 %v571_v60, %v1172_v62  ;;  %v588_v47 = vmul.f32 %v572_v0, %v1194_v15 }
  0x98   :  { %v589_v39 = vadd.f32 %v581_v24, %v573_v21  ;;  %v590_v48 = vadd.f32 %v582_v25, %v574_v26  ;;  %v591_v36 = vadd.f32 %v583_v2, %v575_v31  ;;  %v592_v7 = vadd.f32 %v584_v32, %v576_v11 }
  0x99   :  { %v593_v49 = vadd.f32 %v585_v33, %v577_v38  ;;  %v594_v46 = vadd.f32 %v586_v28, %v578_v12  ;;  %v595_v51 = vadd.f32 %v587_v44, %v579_v37  ;;  %v596_v16 = vadd.f32 %v588_v47, %v580_v35 }
  0x9a   :  { %v597_v50 = vand.u32 2147483647, %v860_v3  ;;  %v598_v41 = vand.u32 2147483647, %v862_v4  ;;  %v599_v53 = vand.u32 2147483647, %v864_v5  ;;  %v621_v40 = vmul.f32 %v860_v3, %v589_v39 }
  0x9b   :  { %v600_v42 = vand.u32 2147483647, %v866_v6  ;;  %v601_v62 = vand.u32 2147483647, %v868_v8  ;;  %v602_v15 = vand.u32 2147483647, %v870_v9  ;;  %v622_v63 = vmul.f32 %v862_v4, %v590_v48 }
  0x9c   :  { %v603_v43 = vand.u32 2147483647, %v876_v14  ;;  %v604_v52 = vand.u32 2147483647, %v883_v20  ;;  %vm1387_vm8 = vcmp.eq.f32.partialorder %v597_v50, 1.0  ;;  %vm1391_vm11 = vcmp.eq.f32.partialorder %v598_v41, 1.0 }
  0x9d   :  { %vm1395_vm6 = vcmp.eq.f32.partialorder %v599_v53, 1.0  ;;  %vm1399_vm7 = vcmp.eq.f32.partialorder %v600_v42, 1.0  ;;  %vm1403_vm1 = vcmp.eq.f32.partialorder %v601_v62, 1.0  ;;  %vm1407_vm2 = vcmp.eq.f32.partialorder %v602_v15, 1.0  ;;  %v661_v42 = vld [vmem:[#allocation3] sm:$0xff] }
  0x9e   :  { %vm1411_vm10 = vcmp.eq.f32.partialorder %v603_v43, 1.0  ;;  %vm1415_vm3 = vcmp.eq.f32.partialorder %v604_v52, 1.0  ;;  %v613_v56 = vmul.f32 inf, %v860_v3  ;;  %v614_v22 = vmul.f32 inf, %v862_v4  ;;  %v662_v43 = vld [vmem:[#allocation3 + $0x8] sm:$0xff] }
  0x9f   :  { %v615_v58 = vmul.f32 inf, %v864_v5  ;;  %v616_v18 = vmul.f32 inf, %v866_v6  ;;  %v617_v61 = vmul.f32 inf, %v868_v8  ;;  %v618_v29 = vmul.f32 inf, %v870_v9 }
  0xa0   :  { %v619_v13 = vmul.f32 inf, %v876_v14  ;;  %v620_v30 = vmul.f32 inf, %v883_v20  ;;  %v623_v23 = vmul.f32 %v864_v5, %v591_v36  ;;  %v624_v3 = vmul.f32 %v866_v6, %v592_v7 }
  0xa1   :  { %v625_v19 = vmul.f32 %v868_v8, %v593_v49  ;;  %v626_v34 = vmul.f32 %v870_v9, %v594_v46  ;;  %v627_v60 = vmul.f32 %v876_v14, %v595_v51  ;;  %v628_v0 = vmul.f32 %v883_v20, %v596_v16 }
  0xa2   :  { %v629_v24 = vsel %vm1387_vm8, %v613_v56, %v621_v40  ;;  %v630_v25 = vsel %vm1391_vm11, %v614_v22, %v622_v63  ;;  %v631_v4 = vsel %vm1395_vm6, %v615_v58, %v623_v23  ;;  %v632_v5 = vsel %vm1399_vm7, %v616_v18, %v624_v3 }
  0xa3   :  { %v633_v6 = vsel %vm1403_vm1, %v617_v61, %v625_v19  ;;  %v634_v8 = vsel %vm1407_vm2, %v618_v29, %v626_v34  ;;  %v635_v9 = vsel %vm1411_vm10, %v619_v13, %v627_v60  ;;  %v636_v14 = vsel %vm1415_vm3, %v620_v30, %v628_v0 }
  0xa4   :  { %v637_v20 = vmul.f32 1.4142135, %v629_v24  ;;  %v638_v2 = vmul.f32 1.4142135, %v630_v25  ;;  %v639_v27 = vmul.f32 1.4142135, %v631_v4 }
  0xa5   :  { %v640_v21 = vmul.f32 1.4142135, %v632_v5  ;;  %v641_v26 = vmul.f32 1.4142135, %v633_v6  ;;  %v642_v31 = vmul.f32 1.4142135, %v634_v8 }
  0xa6   :  { %v643_v32 = vmul.f32 1.4142135, %v635_v9  ;;  %v644_v11 = vmul.f32 1.4142135, %v636_v14  ;;  %v645_v38 = vmul.f32 0.05, %v637_v20 }
  0xa7   :  { %v646_v12 = vmul.f32 0.05, %v638_v2  ;;  %v647_v33 = vmul.f32 0.05, %v639_v27  ;;  %v648_v37 = vmul.f32 0.05, %v640_v21 }
  0xa8   :  { %v649_v35 = vmul.f32 0.05, %v641_v26  ;;  %v650_v28 = vmul.f32 0.05, %v642_v31  ;;  %v651_v44 = vmul.f32 0.05, %v643_v32 }
  0xa9   :  { %v652_v47 = vmul.f32 0.05, %v644_v11  ;;  %v653_v39 = vadd.f32 0.1, %v645_v38  ;;  %v654_v48 = vadd.f32 0.1, %v646_v12 }
  0xaa   :  { %v655_v36 = vadd.f32 0.1, %v647_v33  ;;  %v656_v7 = vadd.f32 0.1, %v648_v37  ;;  %v657_v49 = vadd.f32 0.1, %v649_v35 }
  0xab   :  { %v658_v46 = vadd.f32 0.1, %v650_v28  ;;  %v659_v51 = vadd.f32 0.1, %v651_v44  ;;  %v660_v16 = vadd.f32 0.1, %v652_v47 }
  0xac   :  { %v671_v50 = vrot.slane %v654_v48, 6  ;;  %v672_v41 = vrot.slane %v655_v36, 4  ;;  %v673_v53 = vrot.slane %v656_v7, 2  ;;  %vm677_vm9 = vcmask 1041408  }
  0xad   :  { %v674_v62 = vrot.slane %v658_v46, 6  ;;  %v675_v15 = vrot.slane %v659_v51, 4  ;;  %v676_v40 = vrot.slane %v660_v16, 2  ;;  %vm679_vm4 = vcmask 1045508  }
  0xae   :  { %v678_v52 = vsel %vm677_vm9, %v653_v39, %v671_v50  ;;  %v680_v17 = vsel %vm679_vm4, %v672_v41, %v673_v53  ;;  %vm681_vm5 = vcmask 1043456  }
  0xaf   :  { %v682_v54 = vsel %vm681_vm5, %v678_v52, %v680_v17  ;;  %v683_v45 = vsel %vm677_vm9, %v657_v49, %v674_v62  ;;  %v684_v55 = vsel %vm679_vm4, %v675_v15, %v676_v40 }
  0xb0   :  { %v685_v57 = vsel %vm681_vm5, %v683_v45, %v684_v55  ;;  %v688_v59 = vadd.f32 %v682_v54, %v661_v42 }
  0xb1   :  { %v689_v1 = vadd.f32 %v685_v57, %v662_v43 }
  0xb2   :  { %690 = vst [vmem:[#allocation6] sm:$0xff] %v688_v59 }
  0xb3   :  { %691 = vst [vmem:[#allocation6 + $0x8] sm:$0xff] %v689_v1 }
  0xb4   :  { %702 = dma.vmem_to_hbm [thread:$0]  %s698_s1, 256, %s700_s19, [#allocation5]  }
  0xb5   :  { %826 = dma.done.wait [#allocation5], 256  }
  0xb6   :  { %827 = vsyncadd [#allocation5], 4294967040 }
  0xb7   :  { %707 = vsyncpa [#allocation4], 1 }
  0xb8   :  { %708 = vsyncpa [#allocation5], 1 }

</bundles_post_ra>
